<compile_context>
chip_gen: v6e
topology: v6e:2x2x1
jax: 0.10.0
libtpu: 0.0.40
codegen_flags: <defaults>
</compile_context>

<pallas_src>
import functools
import math

import jax
import jax.numpy as jnp
from jax.experimental import pallas as pl
from jax.experimental.pallas import tpu as pltpu


# ----------------------------------------------------------------------------
# Kernel: one batch element per grid step.
# ----------------------------------------------------------------------------
def _cross_attn_kernel(qpe_ref, src_ref, mask_ref, w_ref, b_ref, *out_refs,
                       nhead, compute_dtype, approx_recip, with_weights):
    out_ref = out_refs[0]
    wout_ref = out_refs[1] if with_weights else None

    _, n_q, d = qpe_ref.shape
    n_p = src_ref.shape[1]
    hd = d // nhead
    inv_h = 1.0 / nhead
    cdt = compute_dtype

    x = qpe_ref[0]          # (n_q, d) f32  (query + pos-embed; also the residual)
    s_in = src_ref[0]       # (n_p, d) f32
    w = w_ref[...]          # (d, 4d) compute dtype: [Wq^T*scale | Wk^T | Wv^T | Wo^T]
    bias = b_ref[...]       # (1, 4d) f32:           [bq*scale   | bk   | bv   | bo  ]

    # Full-width input projections (f32 accumulation on the MXU).
    q = jnp.dot(x.astype(cdt), w[:, :d],
                preferred_element_type=jnp.float32) + bias[:, :d]           # (n_q, d)
    kv = jnp.dot(s_in.astype(cdt), w[:, d:3 * d],
                 preferred_element_type=jnp.float32) + bias[:, d:3 * d]     # (n_p, 2d)

    qc = q.astype(cdt)
    kvc = kv.astype(cdt)

    # Head split via static lane slices stacked along a new leading (batch) dim.
    q3 = jnp.stack([qc[:, h * hd:(h + 1) * hd] for h in range(nhead)], axis=0)
    k3 = jnp.stack([kvc[:, h * hd:(h + 1) * hd] for h in range(nhead)], axis=0)
    v3 = jnp.stack([kvc[:, d + h * hd:d + (h + 1) * hd] for h in range(nhead)],
                   axis=0)                                                  # (H, n_p, hd)

    # Scaled dot-product scores (scale already folded into Wq/bq), head-batched.
    s = jnp.einsum('hqc,hkc->hqk', q3, k3,
                   preferred_element_type=jnp.float32)                      # (H, n_q, n_p)

    # Additive mask built in-kernel (1 => disallowed). mask block is (1, mq, n_p)
    # with mq in {1, n_q}; broadcasting covers both specializations.
    masked = mask_ref[0] != 0                                               # (mq, n_p)
    s = jnp.where(masked[None], jnp.float32(-1e30), s)

    # Softmax in f32; normalization via EUP reciprocal.
    m = jnp.max(s, axis=-1, keepdims=True)
    e = jnp.exp(s - m)
    denom = jnp.sum(e, axis=-1, keepdims=True)
    p = e * pl.reciprocal(denom, approx=approx_recip)                       # (H, n_q, n_p)

    # Per-head context, then merge heads back to d lanes for a full-width out-proj.
    ctx = jnp.einsum('hqk,hkc->hqc', p.astype(cdt), v3,
                     preferred_element_type=jnp.float32)                    # (H, n_q, hd)
    ctx2 = jnp.concatenate([ctx[h] for h in range(nhead)], axis=-1)         # (n_q, d)

    attn = jnp.dot(ctx2.astype(cdt), w[:, 3 * d:],
                   preferred_element_type=jnp.float32) + bias[:, 3 * d:]    # (n_q, d)

    out_ref[0] = (attn + x).astype(out_ref.dtype)                           # residual add
    if with_weights:
        wout_ref[0] = (jnp.sum(p, axis=0) * inv_h).astype(wout_ref.dtype)   # head-avg wts


# ----------------------------------------------------------------------------
# Wrapper: parameter packing, mask packing, grid / BlockSpec setup.
# ----------------------------------------------------------------------------
def cross_attention_layer(source, query, batch_mask, attn_mask, pe, params, nhead,
                          *, compute_dtype=jnp.bfloat16, approx_recip=True,
                          return_weights=True):
    B, n_q, d = query.shape
    n_p = source.shape[1]
    assert d % nhead == 0
    hd = d // nhead
    scale = 1.0 / math.sqrt(hd)

    qpe = (query if pe is None else query + pe).astype(jnp.float32)
    src = source.astype(jnp.float32)

    # Single combined int8 mask (1 == disallowed); specialized when no attn_mask.
    bmask = batch_mask.reshape(B, 1, n_p)
    if attn_mask is None:
        mask = bmask.astype(jnp.int8)                                # (B, 1, n_p)
    else:
        mask = jnp.logical_or(attn_mask, bmask).astype(jnp.int8)     # (B, n_q, n_p)
    mq = mask.shape[1]

    # PyTorch packed in_proj: rows [Q; K; V]. Pack all projection weights into a
    # single (d, 4d) operand; fold the 1/sqrt(hd) scale into Wq and bq.
    w_in = params["in_proj_weight"]                                  # (3d, d)
    b_in = params["in_proj_bias"]                                    # (3d,)
    w_all = jnp.concatenate(
        [w_in[:d].T * scale, w_in[d:].T, params["out_proj_weight"].T],
        axis=1).astype(compute_dtype)                                # (d, 4d)
    b_all = jnp.concatenate(
        [b_in[:d] * scale, b_in[d:], params["out_proj_bias"]]
    ).reshape(1, 4 * d).astype(jnp.float32)                          # (1, 4d)

    itemsize = jnp.dtype(compute_dtype).itemsize
    flops = 2 * B * (n_q * d * d            # Q projection
                     + n_p * d * (2 * d)    # packed K/V projection
                     + n_q * n_p * d        # scores (summed over heads)
                     + n_q * n_p * d        # context
                     + n_q * d * d)         # output projection
    bytes_accessed = ((qpe.size + src.size) * 4
                      + mask.size                                    # int8
                      + w_all.size * itemsize + b_all.size * 4
                      + B * n_q * d * 4
                      + (B * n_q * n_p * 4 if return_weights else 0))
    cost = pl.CostEstimate(flops=flops,
                           transcendentals=B * nhead * n_q * n_p,
                           bytes_accessed=bytes_accessed)

    in_specs = [
        pl.BlockSpec((1, n_q, d), lambda b: (b, 0, 0)),
        pl.BlockSpec((1, n_p, d), lambda b: (b, 0, 0)),
        pl.BlockSpec((1, mq, n_p), lambda b: (b, 0, 0)),
        pl.BlockSpec((d, 4 * d), lambda b: (0, 0)),      # constant block -> fetched once
        pl.BlockSpec((1, 4 * d), lambda b: (0, 0)),
    ]
    if return_weights:
        out_shape = (jax.ShapeDtypeStruct((B, n_q, d), jnp.float32),
                     jax.ShapeDtypeStruct((B, n_q, n_p), jnp.float32))
        out_specs = (pl.BlockSpec((1, n_q, d), lambda b: (b, 0, 0)),
                     pl.BlockSpec((1, n_q, n_p), lambda b: (b, 0, 0)))
    else:
        out_shape = jax.ShapeDtypeStruct((B, n_q, d), jnp.float32)
        out_specs = pl.BlockSpec((1, n_q, d), lambda b: (b, 0, 0))

    outs = pl.pallas_call(
        functools.partial(_cross_attn_kernel, nhead=nhead,
                          compute_dtype=compute_dtype, approx_recip=approx_recip,
                          with_weights=return_weights),
        grid=(B,),
        in_specs=in_specs,
        out_specs=out_specs,
        out_shape=out_shape,
        compiler_params=pltpu.CompilerParams(dimension_semantics=("parallel",)),
        cost_estimate=cost,
    )(qpe, src, mask, w_all, b_all)

    # TODO(synk): self.dropout(output) / self.norm(output) results are discarded
    # in the reference forward, so they are intentionally not applied here.
    if return_weights:
        out, weights = outs
        return out, weights
    return outs, None


# ----------------------------------------------------------------------------
# Pure-JAX reference (mirrors nn.MultiheadAttention math) for sanity checks.
# ----------------------------------------------------------------------------
def reference(source, query, batch_mask, attn_mask, pe, params, nhead):
    B, n_q, d = query.shape
    n_p = source.shape[1]
    hd = d // nhead
    qpe = query if pe is None else query + pe
    q = qpe @ params["in_proj_weight"][:d].T + params["in_proj_bias"][:d]
    k = source @ params["in_proj_weight"][d:2 * d].T + params["in_proj_bias"][d:2 * d]
    v = source @ params["in_proj_weight"][2 * d:].T + params["in_proj_bias"][2 * d:]
    q = q.reshape(B, n_q, nhead, hd).transpose(0, 2, 1, 3)
    k = k.reshape(B, n_p, nhead, hd).transpose(0, 2, 1, 3)
    v = v.reshape(B, n_p, nhead, hd).transpose(0, 2, 1, 3)
    s = jnp.einsum("bhqd,bhkd->bhqk", q, k) / math.sqrt(hd)
    if attn_mask is None:
        masked = jnp.broadcast_to(batch_mask[:, None, :], (B, n_q, n_p))[:, None]
    else:
        masked = jnp.logical_or(attn_mask, batch_mask[:, None, :])[:, None]
    s = s + jnp.where(masked, -1e30, 0.0)
    p = jax.nn.softmax(s, axis=-1)
    ctx = jnp.einsum("bhqk,bhkd->bhqd", p, v).transpose(0, 2, 1, 3).reshape(B, n_q, d)
    attn_out = ctx @ params["out_proj_weight"].T + params["out_proj_bias"]
    return attn_out + qpe, p.mean(axis=1)


# ----------------------------------------------------------------------------
# Deterministic parameter init (xavier-uniform-like, shapes from __init__)
# ----------------------------------------------------------------------------
def init_params(key, d_model):
    k1, k2 = jax.random.split(key)
    lim_in = math.sqrt(6.0 / (d_model + 3 * d_model))
    lim_out = math.sqrt(6.0 / (d_model + d_model))
    return {
        "in_proj_weight": jax.random.uniform(k1, (3 * d_model, d_model),
                                             jnp.float32, -lim_in, lim_in),
        "in_proj_bias": jnp.zeros((3 * d_model,), jnp.float32),
        "out_proj_weight": jax.random.uniform(k2, (d_model, d_model),
                                              jnp.float32, -lim_out, lim_out),
        "out_proj_bias": jnp.zeros((d_model,), jnp.float32),
        # norm params exist in the module but its output is discarded in forward.
    }


if __name__ == "__main__":
    B, n_q, n_p, d_model, nhead = 2, 8, 16, 32, 4

    key = jax.random.PRNGKey(0)
    kq, ks, kp, ka, kparam = jax.random.split(key, 5)

    query = jax.random.normal(kq, (B, n_q, d_model), jnp.float32)
    source = jax.random.normal(ks, (B, n_p, d_model), jnp.float32)
    pe = 0.1 * jax.random.normal(kp, (B, n_q, d_model), jnp.float32)

    # key padding: batch 0 has no padding, batch 1 pads the last 4 keys
    valid_lens = jnp.array([[n_p], [n_p - 4]], jnp.int32)
    batch_mask = jnp.arange(n_p)[None, :] >= valid_lens              # (B, n_p) bool

    # random attention mask; keep key 0 always attendable so no row is fully masked
    attn_mask = jax.random.uniform(ka, (B, n_q, n_p)) < 0.2
    attn_mask = attn_mask.at[:, :, 0].set(False)

    params = init_params(kparam, d_model)

    ref_out, ref_w = reference(source, query, batch_mask, attn_mask, pe, params, nhead)

    # 1) Default fast path: bf16 MXU operands, f32 accumulation/softmax, EUP recip.
    out, weights = cross_attention_layer(source, query, batch_mask, attn_mask,
                                         pe, params, nhead)
    out = jax.block_until_ready(out)
    weights = jax.block_until_ready(weights)
    assert out.shape == (B, n_q, d_model) and weights.shape == (B, n_q, n_p)
    assert float(jnp.max(jnp.abs(out - ref_out))) < 1e-1, "bf16 output sanity failed"
    assert float(jnp.max(jnp.abs(weights - ref_w))) < 5e-2, "bf16 weights sanity failed"

    # 2) Full-precision path: f32 MXU math + exact reciprocal -> tight check.
    out32, w32 = cross_attention_layer(source, query, batch_mask, attn_mask,
                                       pe, params, nhead,
                                       compute_dtype=jnp.float32,
                                       approx_recip=False)
    out32 = jax.block_until_ready(out32)
    w32 = jax.block_until_ready(w32)
    assert jnp.allclose(out32, ref_out, atol=1e-4), "f32 output mismatch vs reference"
    assert jnp.allclose(w32, ref_w, atol=1e-5), "f32 attn weights mismatch vs reference"

    # 3) attn_mask=None specialization + weights output skipped.
    ref_out_nm, _ = reference(source, query, batch_mask, None, pe, params, nhead)
    out_nm, w_none = cross_attention_layer(source, query, batch_mask, None,
                                           pe, params, nhead,
                                           compute_dtype=jnp.float32,
                                           approx_recip=False,
                                           return_weights=False)
    out_nm = jax.block_until_ready(out_nm)
    assert w_none is None
    assert jnp.allclose(out_nm, ref_out_nm, atol=1e-4), "no-attn-mask output mismatch"

    print("KERNEL_OK")
</pallas_src>

<mosaic_0001>
module attributes {stable_mosaic.version = 11 : i64} {
  func.func @_cross_attn_kernel(%arg0: i32, %arg1: memref<1x8x32xf32, #tpu.memory_space<vmem>>, %arg2: memref<1x16x32xf32, #tpu.memory_space<vmem>>, %arg3: memref<1x8x16xi8, #tpu.memory_space<vmem>>, %arg4: memref<32x128xbf16, #tpu.memory_space<vmem>>, %arg5: memref<1x128xf32, #tpu.memory_space<vmem>>, %arg6: memref<1x8x32xf32, #tpu.memory_space<vmem>>, %arg7: memref<1x8x16xf32, #tpu.memory_space<vmem>>) attributes {dimension_semantics = [#tpu.dimension_semantics<parallel>], iteration_bounds = array<i64: 2>, scalar_prefetch = 0 : i64, scratch_operands = 0 : i64, tpu.core_type = #tpu.core_type<tc>, window_params = [{transform_indices = @transform_0, window_bounds = array<i64: 1, 8, 32>}, {transform_indices = @transform_1, window_bounds = array<i64: 1, 16, 32>}, {transform_indices = @transform_2, window_bounds = array<i64: 1, 8, 16>}, {pipeline_mode = #tpu.pipeline_mode<synchronous>, transform_indices = @transform_3, window_bounds = array<i64: 32, 128>}, {pipeline_mode = #tpu.pipeline_mode<synchronous>, transform_indices = @transform_4, window_bounds = array<i64: 1, 128>}, {transform_indices = @transform_5, window_bounds = array<i64: 1, 8, 32>}, {transform_indices = @transform_6, window_bounds = array<i64: 1, 8, 16>}]} {
    %c0 = arith.constant 0 : index
    %c0_0 = arith.constant 0 : index
    %c0_1 = arith.constant 0 : index
    %0 = vector.load %arg1[%c0, %c0_0, %c0_1] : memref<1x8x32xf32, #tpu.memory_space<vmem>>, vector<1x8x32xf32>
    %1 = vector.shape_cast %0 : vector<1x8x32xf32> to vector<8x32xf32>
    %c0_2 = arith.constant 0 : index
    %c0_3 = arith.constant 0 : index
    %c0_4 = arith.constant 0 : index
    %2 = vector.load %arg2[%c0_2, %c0_3, %c0_4] : memref<1x16x32xf32, #tpu.memory_space<vmem>>, vector<1x16x32xf32>
    %3 = vector.shape_cast %2 : vector<1x16x32xf32> to vector<16x32xf32>
    %c0_5 = arith.constant 0 : index
    %c0_6 = arith.constant 0 : index
    %4 = vector.load %arg4[%c0_5, %c0_6] : memref<32x128xbf16, #tpu.memory_space<vmem>>, vector<32x128xbf16>
    %c0_7 = arith.constant 0 : index
    %c0_8 = arith.constant 0 : index
    %5 = vector.load %arg5[%c0_7, %c0_8] : memref<1x128xf32, #tpu.memory_space<vmem>>, vector<1x128xf32>
    %6 = arith.truncf %1 : vector<8x32xf32> to vector<8x32xbf16>
    %7 = vector.extract_strided_slice %4 {offsets = [0, 0], sizes = [32, 32], strides = [1, 1]} : vector<32x128xbf16> to vector<32x32xbf16>
    %cst = arith.constant dense<0.000000e+00> : vector<8x32xf32>
    %8 = tpu.matmul %6, %7, %cst {dimension_numbers = #tpu.dot_dimension_numbers<[1], [0], [0], [1], [0, 0, 1, 1], [], []>} : vector<8x32xbf16>, vector<32x32xbf16>, vector<8x32xf32> -> vector<8x32xf32>
    %9 = vector.extract_strided_slice %5 {offsets = [0, 0], sizes = [1, 32], strides = [1, 1]} : vector<1x128xf32> to vector<1x32xf32>
    %10 = vector.broadcast %9 : vector<1x32xf32> to vector<8x32xf32>
    %11 = arith.addf %8, %10 : vector<8x32xf32>
    %12 = arith.truncf %3 : vector<16x32xf32> to vector<16x32xbf16>
    %13 = vector.extract_strided_slice %4 {offsets = [0, 32], sizes = [32, 64], strides = [1, 1]} : vector<32x128xbf16> to vector<32x64xbf16>
    %cst_9 = arith.constant dense<0.000000e+00> : vector<16x64xf32>
    %14 = tpu.matmul %12, %13, %cst_9 {dimension_numbers = #tpu.dot_dimension_numbers<[1], [0], [0], [1], [0, 0, 1, 1], [], []>} : vector<16x32xbf16>, vector<32x64xbf16>, vector<16x64xf32> -> vector<16x64xf32>
    %15 = vector.extract_strided_slice %5 {offsets = [0, 32], sizes = [1, 64], strides = [1, 1]} : vector<1x128xf32> to vector<1x64xf32>
    %16 = vector.broadcast %15 : vector<1x64xf32> to vector<16x64xf32>
    %17 = arith.addf %14, %16 : vector<16x64xf32>
    %18 = arith.truncf %11 : vector<8x32xf32> to vector<8x32xbf16>
    %19 = arith.truncf %17 : vector<16x64xf32> to vector<16x64xbf16>
    %20 = vector.extract_strided_slice %18 {offsets = [0, 0], sizes = [8, 8], strides = [1, 1]} : vector<8x32xbf16> to vector<8x8xbf16>
    %21 = vector.extract_strided_slice %18 {offsets = [0, 8], sizes = [8, 8], strides = [1, 1]} : vector<8x32xbf16> to vector<8x8xbf16>
    %22 = vector.extract_strided_slice %18 {offsets = [0, 16], sizes = [8, 8], strides = [1, 1]} : vector<8x32xbf16> to vector<8x8xbf16>
    %23 = vector.extract_strided_slice %18 {offsets = [0, 24], sizes = [8, 8], strides = [1, 1]} : vector<8x32xbf16> to vector<8x8xbf16>
    %24 = vector.shape_cast %20 : vector<8x8xbf16> to vector<1x8x8xbf16>
    %25 = vector.shape_cast %21 : vector<8x8xbf16> to vector<1x8x8xbf16>
    %26 = vector.shape_cast %22 : vector<8x8xbf16> to vector<1x8x8xbf16>
    %27 = vector.shape_cast %23 : vector<8x8xbf16> to vector<1x8x8xbf16>
    %28 = tpu.concatenate %24, %25, %26, %27 in 0 : vector<1x8x8xbf16>, vector<1x8x8xbf16>, vector<1x8x8xbf16>, vector<1x8x8xbf16> -> vector<4x8x8xbf16>
    %29 = vector.extract_strided_slice %19 {offsets = [0, 0], sizes = [16, 8], strides = [1, 1]} : vector<16x64xbf16> to vector<16x8xbf16>
    %30 = vector.extract_strided_slice %19 {offsets = [0, 8], sizes = [16, 8], strides = [1, 1]} : vector<16x64xbf16> to vector<16x8xbf16>
    %31 = vector.extract_strided_slice %19 {offsets = [0, 16], sizes = [16, 8], strides = [1, 1]} : vector<16x64xbf16> to vector<16x8xbf16>
    %32 = vector.extract_strided_slice %19 {offsets = [0, 24], sizes = [16, 8], strides = [1, 1]} : vector<16x64xbf16> to vector<16x8xbf16>
    %33 = vector.shape_cast %29 : vector<16x8xbf16> to vector<1x16x8xbf16>
    %34 = vector.shape_cast %30 : vector<16x8xbf16> to vector<1x16x8xbf16>
    %35 = vector.shape_cast %31 : vector<16x8xbf16> to vector<1x16x8xbf16>
    %36 = vector.shape_cast %32 : vector<16x8xbf16> to vector<1x16x8xbf16>
    %37 = tpu.concatenate %33, %34, %35, %36 in 0 : vector<1x16x8xbf16>, vector<1x16x8xbf16>, vector<1x16x8xbf16>, vector<1x16x8xbf16> -> vector<4x16x8xbf16>
    %38 = vector.extract_strided_slice %19 {offsets = [0, 32], sizes = [16, 8], strides = [1, 1]} : vector<16x64xbf16> to vector<16x8xbf16>
    %39 = vector.extract_strided_slice %19 {offsets = [0, 40], sizes = [16, 8], strides = [1, 1]} : vector<16x64xbf16> to vector<16x8xbf16>
    %40 = vector.extract_strided_slice %19 {offsets = [0, 48], sizes = [16, 8], strides = [1, 1]} : vector<16x64xbf16> to vector<16x8xbf16>
    %41 = vector.extract_strided_slice %19 {offsets = [0, 56], sizes = [16, 8], strides = [1, 1]} : vector<16x64xbf16> to vector<16x8xbf16>
    %42 = vector.shape_cast %38 : vector<16x8xbf16> to vector<1x16x8xbf16>
    %43 = vector.shape_cast %39 : vector<16x8xbf16> to vector<1x16x8xbf16>
    %44 = vector.shape_cast %40 : vector<16x8xbf16> to vector<1x16x8xbf16>
    %45 = vector.shape_cast %41 : vector<16x8xbf16> to vector<1x16x8xbf16>
    %46 = tpu.concatenate %42, %43, %44, %45 in 0 : vector<1x16x8xbf16>, vector<1x16x8xbf16>, vector<1x16x8xbf16>, vector<1x16x8xbf16> -> vector<4x16x8xbf16>
    "tpu.trace_start"() <{level = 10 : i32, message = "hqc,hkc->hqk"}> : () -> ()
    %cst_10 = arith.constant dense<0.000000e+00> : vector<4x8x16xf32>
    %47 = tpu.matmul %28, %37, %cst_10 {dimension_numbers = #tpu.dot_dimension_numbers<[2], [2], [1], [1], [0, 0, 0, 1, 1, 1], [0], [0]>} : vector<4x8x8xbf16>, vector<4x16x8xbf16>, vector<4x8x16xf32> -> vector<4x8x16xf32>
    "tpu.trace_stop"() : () -> ()
    %c0_11 = arith.constant 0 : index
    %c0_12 = arith.constant 0 : index
    %c0_13 = arith.constant 0 : index
    %48 = vector.load %arg3[%c0_11, %c0_12, %c0_13] : memref<1x8x16xi8, #tpu.memory_space<vmem>>, vector<1x8x16xi8>
    %49 = vector.shape_cast %48 : vector<1x8x16xi8> to vector<8x16xi8>
    %c0_i8 = arith.constant 0 : i8
    %50 = vector.broadcast %c0_i8 : i8 to vector<8x16xi8>
    %51 = arith.cmpi ne, %49, %50 : vector<8x16xi8>
    %52 = vector.shape_cast %51 : vector<8x16xi1> to vector<1x8x16xi1>
    %cst_14 = arith.constant -1.000000e+30 : f32
    %53 = vector.shape_cast %52 : vector<1x8x16xi1> to vector<1x8x16xi1>
    %54 = vector.broadcast %53 : vector<1x8x16xi1> to vector<4x8x16xi1>
    %55 = vector.broadcast %cst_14 : f32 to vector<4x8x16xf32>
    %56 = arith.select %54, %55, %47 : vector<4x8x16xi1>, vector<4x8x16xf32>
    %cst_15 = arith.constant dense<0xFF800000> : vector<4x8xf32>
    %57 = vector.multi_reduction <maximumf>, %56, %cst_15 [2] : vector<4x8x16xf32> to vector<4x8xf32>
    %58 = vector.shape_cast %57 : vector<4x8xf32> to vector<4x8x1xf32>
    %59 = vector.broadcast %58 : vector<4x8x1xf32> to vector<4x8x16xf32>
    %60 = arith.subf %56, %59 : vector<4x8x16xf32>
    %61 = math.exp %60 : vector<4x8x16xf32>
    %cst_16 = arith.constant dense<0.000000e+00> : vector<4x8xf32>
    %62 = vector.multi_reduction <add>, %61, %cst_16 [2] : vector<4x8x16xf32> to vector<4x8xf32>
    %63 = vector.shape_cast %62 : vector<4x8xf32> to vector<4x8x1xf32>
    %64 = tpu.reciprocal %63 {approx = true} : vector<4x8x1xf32> -> vector<4x8x1xf32>
    %65 = vector.broadcast %64 : vector<4x8x1xf32> to vector<4x8x16xf32>
    %66 = arith.mulf %61, %65 : vector<4x8x16xf32>
    %67 = arith.truncf %66 : vector<4x8x16xf32> to vector<4x8x16xbf16>
    "tpu.trace_start"() <{level = 10 : i32, message = "hqk,hkc->hqc"}> : () -> ()
    %cst_17 = arith.constant dense<0.000000e+00> : vector<4x8x8xf32>
    %68 = tpu.matmul %67, %46, %cst_17 {dimension_numbers = #tpu.dot_dimension_numbers<[2], [1], [1], [2], [0, 0, 0, 1, 1, 2], [0], [0]>} : vector<4x8x16xbf16>, vector<4x16x8xbf16>, vector<4x8x8xf32> -> vector<4x8x8xf32>
    "tpu.trace_stop"() : () -> ()
    %69 = vector.extract_strided_slice %68 {offsets = [0, 0, 0], sizes = [1, 8, 8], strides = [1, 1, 1]} : vector<4x8x8xf32> to vector<1x8x8xf32>
    %70 = vector.shape_cast %69 : vector<1x8x8xf32> to vector<8x8xf32>
    %71 = vector.extract_strided_slice %68 {offsets = [1, 0, 0], sizes = [1, 8, 8], strides = [1, 1, 1]} : vector<4x8x8xf32> to vector<1x8x8xf32>
    %72 = vector.shape_cast %71 : vector<1x8x8xf32> to vector<8x8xf32>
    %73 = vector.extract_strided_slice %68 {offsets = [2, 0, 0], sizes = [1, 8, 8], strides = [1, 1, 1]} : vector<4x8x8xf32> to vector<1x8x8xf32>
    %74 = vector.shape_cast %73 : vector<1x8x8xf32> to vector<8x8xf32>
    %75 = vector.extract_strided_slice %68 {offsets = [3, 0, 0], sizes = [1, 8, 8], strides = [1, 1, 1]} : vector<4x8x8xf32> to vector<1x8x8xf32>
    %76 = vector.shape_cast %75 : vector<1x8x8xf32> to vector<8x8xf32>
    %77 = tpu.concatenate %70, %72, %74, %76 in 1 : vector<8x8xf32>, vector<8x8xf32>, vector<8x8xf32>, vector<8x8xf32> -> vector<8x32xf32>
    %78 = arith.truncf %77 : vector<8x32xf32> to vector<8x32xbf16>
    %79 = vector.extract_strided_slice %4 {offsets = [0, 96], sizes = [32, 32], strides = [1, 1]} : vector<32x128xbf16> to vector<32x32xbf16>
    %cst_18 = arith.constant dense<0.000000e+00> : vector<8x32xf32>
    %80 = tpu.matmul %78, %79, %cst_18 {dimension_numbers = #tpu.dot_dimension_numbers<[1], [0], [0], [1], [0, 0, 1, 1], [], []>} : vector<8x32xbf16>, vector<32x32xbf16>, vector<8x32xf32> -> vector<8x32xf32>
    %81 = vector.extract_strided_slice %5 {offsets = [0, 96], sizes = [1, 32], strides = [1, 1]} : vector<1x128xf32> to vector<1x32xf32>
    %82 = vector.broadcast %81 : vector<1x32xf32> to vector<8x32xf32>
    %83 = arith.addf %80, %82 : vector<8x32xf32>
    %84 = arith.addf %83, %1 : vector<8x32xf32>
    %c0_19 = arith.constant 0 : index
    %c0_20 = arith.constant 0 : index
    %c0_21 = arith.constant 0 : index
    %85 = vector.load %arg6[%c0_19, %c0_20, %c0_21] : memref<1x8x32xf32, #tpu.memory_space<vmem>>, vector<1x8x32xf32>
    %86 = vector.shape_cast %85 : vector<1x8x32xf32> to vector<8x32xf32>
    %87 = vector.shape_cast %84 : vector<8x32xf32> to vector<1x8x32xf32>
    tpu.vector_store %arg6[%c0_19, %c0_20, %c0_21], %87 {strides = array<i32>} : memref<1x8x32xf32, #tpu.memory_space<vmem>>, vector<1x8x32xf32>,
    %cst_22 = arith.constant dense<0.000000e+00> : vector<8x16xf32>
    %88 = vector.multi_reduction <add>, %66, %cst_22 [0] : vector<4x8x16xf32> to vector<8x16xf32>
    %cst_23 = arith.constant 2.500000e-01 : f32
    %89 = vector.broadcast %cst_23 : f32 to vector<8x16xf32>
    %90 = arith.mulf %88, %89 : vector<8x16xf32>
    %c0_24 = arith.constant 0 : index
    %c0_25 = arith.constant 0 : index
    %c0_26 = arith.constant 0 : index
    %91 = vector.load %arg7[%c0_24, %c0_25, %c0_26] : memref<1x8x16xf32, #tpu.memory_space<vmem>>, vector<1x8x16xf32>
    %92 = vector.shape_cast %91 : vector<1x8x16xf32> to vector<8x16xf32>
    %93 = vector.shape_cast %90 : vector<8x16xf32> to vector<1x8x16xf32>
    tpu.vector_store %arg7[%c0_24, %c0_25, %c0_26], %93 {strides = array<i32>} : memref<1x8x16xf32, #tpu.memory_space<vmem>>, vector<1x8x16xf32>,
    return
  }
  func.func @transform_0(%arg0: i32) -> (i32, i32, i32) {
    %c0_i32 = arith.constant 0 : i32
    %c0_i32_0 = arith.constant 0 : i32
    %c0_i32_1 = arith.constant 0 : i32
    return %arg0, %c0_i32, %c0_i32_0 : i32, i32, i32
  }
  func.func @transform_1(%arg0: i32) -> (i32, i32, i32) {
    %c0_i32 = arith.constant 0 : i32
    %c0_i32_0 = arith.constant 0 : i32
    %c0_i32_1 = arith.constant 0 : i32
    return %arg0, %c0_i32, %c0_i32_0 : i32, i32, i32
  }
  func.func @transform_2(%arg0: i32) -> (i32, i32, i32) {
    %c0_i32 = arith.constant 0 : i32
    %c0_i32_0 = arith.constant 0 : i32
    %c0_i32_1 = arith.constant 0 : i32
    return %arg0, %c0_i32, %c0_i32_0 : i32, i32, i32
  }
  func.func @transform_3(%arg0: i32) -> (i32, i32) {
    %c0_i32 = arith.constant 0 : i32
    %c0_i32_0 = arith.constant 0 : i32
    %c0_i32_1 = arith.constant 0 : i32
    return %c0_i32, %c0_i32_0 : i32, i32
  }
  func.func @transform_4(%arg0: i32) -> (i32, i32) {
    %c0_i32 = arith.constant 0 : i32
    %c0_i32_0 = arith.constant 0 : i32
    %c0_i32_1 = arith.constant 0 : i32
    return %c0_i32, %c0_i32_0 : i32, i32
  }
  func.func @transform_5(%arg0: i32) -> (i32, i32, i32) {
    %c0_i32 = arith.constant 0 : i32
    %c0_i32_0 = arith.constant 0 : i32
    %c0_i32_1 = arith.constant 0 : i32
    return %arg0, %c0_i32, %c0_i32_0 : i32, i32, i32
  }
  func.func @transform_6(%arg0: i32) -> (i32, i32, i32) {
    %c0_i32 = arith.constant 0 : i32
    %c0_i32_0 = arith.constant 0 : i32
    %c0_i32_1 = arith.constant 0 : i32
    return %arg0, %c0_i32, %c0_i32_0 : i32, i32, i32
  }
}

</mosaic_0001>

<bundles_post_ra>
// kernel: tpu_custom_call.1
= control target key start
LH: loop header
LB: loop body
LE: loop exit
PB: predicated region body
PF: predicated region fallthrough
CT: control target
= control target key end

     0   :  { %s2124_s0 = inlined_call_operand.hbm [shape: f32[2,8,32], index: 0, kind: input, shape index: {}]   ;;  %s2125_s1 = inlined_call_operand.hbm [shape: f32[2,16,32], index: 1, kind: input, shape index: {}]   ;;  %s2126_s2 = inlined_call_operand.hbm [shape: s8[2,8,16], index: 2, kind: input, shape index: {}]   ;;  %s2127_s3 = inlined_call_operand.hbm [shape: bf16[32,128], index: 3, kind: input, shape index: {}]   ;;  %s2128_s4 = inlined_call_operand.vmem [shape: f32[1,128], index: 4, kind: input, shape index: {}]   ;;  %s2129_s5 = inlined_call_operand.hbm [shape: f32[2,8,32], index: 5, kind: output, shape index: {0}]   ;;  %s2130_s6 = inlined_call_operand.hbm [shape: f32[2,8,16], index: 6, kind: output, shape index: {1}]  }
   0x1   :  { %2141 = sst [smem:[#allocation23_spill]] %s2125_s1 }
   0x2   :  { %12 = vsyncpa [#allocation3], 0 }
   0x3   :  { %14 = vsyncpa [#allocation3 + $0x1], 0 }
   0x4   :  { %15 = vsyncpa [#allocation6], 0 }
   0x5   :  { %17 = vsyncpa [#allocation6 + $0x1], 0 }
   0x6   :  { %18 = vsyncpa [#allocation9], 0 }
   0x7   :  { %19 = vsyncpa [#allocation4], 0 }
   0x8   :  { %21 = vsyncpa [#allocation4 + $0x1], 0 }
   0x9   :  { %22 = vsyncpa [#allocation12], 0 }
   0xa   :  { %24 = vsyncpa [#allocation12 + $0x1], 0  ;;  %s1718_s21 = smov 0   ;;  %s1720_s22 = smov 0  }
   0xb   :  { %s1722_s23 = smov 0   ;;  %s1724_s24 = smov 0  }
   0xc LB: > { %2142 = sst [smem:[#allocation18_spill]] %s1648_s21  ;;  %s1739_s25 = sadd.s32 1, %s1660_s24   ;;  %s1660_s24 = sphi %s1724_s24, %s2167_s24   ;;  %s1656_s23 = sphi %s1722_s23, %s2169_s23   ;;  %s1652_s22 = sphi %s1720_s22, %s2171_s22   ;;  %s1648_s21 = sphi %s1718_s21, %s2170_s21  }
   0xd   : > { %2143 = sst [smem:[#allocation19_spill]] %s1656_s23  ;;  %s37_s26 = sadd.s32 1, %s1656_s23 }
   0xe   : > { %2144 = sst [smem:[#allocation20_spill]] %s1739_s25  ;;  %s34_s27 = ssub.s32 %s1660_s24, %s1739_s25 }
   0xf   : > { %p2131_p0 = scmp.ne.s32.totalorder %s1656_s23, %s1652_s22  ;;  %p35_p1 = scmp.eq.s32.totalorder %s34_s27, 0 }
  0x10   : > { %p45_p2 = scmp.eq.s32.totalorder %s1660_s24, 0  ;;  %p1379_p4 = scmp.lt.s32.totalorder %s1660_s24, 2 }
  0x11   : > { %s1750_s28 = scalar_select %p35_p1, %s1656_s23, %s37_s26  }
  0x12   : > { %p46_p5 = por %p45_p2, %p2131_p0  ;;  %s1756_s29 = sand.u32 1, %s1656_s23  }
  0x13   : > { %2145 = sst [smem:[#allocation21_spill]] %s1750_s28  ;;  %s254_s30 = sand.u32 1, %s1660_s24  }
  0x14   : > { %s1213_s7 = sshll.u32 %s1756_s29, 4  ;;  %p1760_p6 = pnand %p1379_p4, %p46_p5 }
  0x15   : > { %s1245_s9 = sshll.u32 %s1660_s24, 8  ;;  %s2147_s1 = sld [smem:[#allocation23_spill]] }
  0x16   : > { %s258_s13 = scalar_lea.vmem [#allocation5], %s1213_s7  ;;  %s1772_s15 = scalar_lea.sflag [#allocation6], %s254_s30 }
  0x17   : > { %s265_s14 = sshll.u32 %s258_s13, 4  ;;  %p1778_p8 = pneg %p1760_p6  ;;  %s1770_s14 = int_to_ptr.vmem [resolvable:$true] %s265_s14 }
  0x1b   : > { %s1768_s12 = scalar_lea.hbm %s2147_s1, %s1245_s9  ;;  %s1453_s20 = scalar_lea.hbm %s2147_s1, 512 }
  0x1c   : > { %s1448_s16 = scalar_lea.hbm %s1768_s12, 256  ;;  %p1454_p11 = scmp.lt.s32.totalorder %s1768_s12, %s2147_s1 }
  0x1d   : > { %p1449_p7 = scmp.ne.s32.totalorder %s1768_s12, %s1448_s16  ;;  %p1455_p12 = scmp.lt.s32.totalorder %s1453_s20, %s1448_s16 }
  0x1f   : > { %p1451_p9 = pnand %p1778_p8, %p1449_p7  ;;  %p1456_p13 = por %p1455_p12, %p1454_p11 }
  0x21   : > { %p1452_p10 = pneg %p1451_p9 }
  0x23   : > { %p1457_p1 = pnand %p1456_p13, %p1452_p10 }
  0x25   : > { %1460 = shalt.err (!%p1457_p1)
}
  0x26   : > { %s1461_s30 = scalar_lea.vmem %s1770_s14, 256  ;;  %s1662_s7 = smov [#allocation5]  }
  0x27   : > { %p1462_p2 = scmp.ne.s32.totalorder %s1770_s14, %s1461_s30  ;;  %s1466_s9 = sshll.u32 %s1662_s7, 4  ;;  %s1467_s9 = int_to_ptr.vmem [resolvable:$false] %s1466_s9 }
  0x28   : > { %s1468_s10 = scalar_lea.vmem %s1467_s9, 512  ;;  %p1469_p7 = scmp.lt.s32.totalorder %s1770_s14, %s1467_s9 }
  0x29   : > { %p1464_p4 = pnand %p1462_p2, %p1778_p8  ;;  %p1470_p9 = scmp.lt.s32.totalorder %s1468_s10, %s1461_s30 }
  0x2b   : > { %p1465_p5 = pneg %p1464_p4  ;;  %p1471_p3 = por %p1470_p9, %p1469_p7 }
  0x2d   : > { %p1472_p0 = pnand %p1471_p3, %p1465_p5 }
  0x2f   : > { %1475 = shalt.err (!%p1472_p0)
}
  0x30   : > { %s1663_s11 = smov 128   ;;  %s1664_s13 = smov 8  }
  0x31   : > { %1367 = dma.hbm_to_vmem [thread:$0]  (!%p1760_p6), %s1768_s12, 256, %s1770_s14, %s1772_s15, %s1663_s11, %s1663_s11, %s1664_s13  }
  0x32   : > { %s1802_s16 = sadd.s32 4294967295, %s1660_s24   ;;  %s1207_s18 = sadd.s32 4294967294, %s1660_s24  }
  0x33   : > { %p50_p0 = scmp.ne.s32.totalorder %s1652_s22, %s1648_s21  ;;  %p2132_p3 = scmp.eq.s32.totalorder %s1802_s16, 0 }
  0x34   : > { %p168_p10 = scmp.eq.s32.totalorder %s1802_s16, 1  ;;  %p174_p11 = scmp.eq.s32.totalorder %s1207_s18, 1 }
  0x35   : > { %p1811_p12 = por %p2132_p3, %p50_p0  ;;  %p1208_p13 = scmp.ge.s32.totalorder %s1660_s24, 1 }
  0x36   : > { %p2150_p1 = scmp.ne.s32.totalorder %s1656_s23, %s1652_s22  ;;  %p1823_p4 = por %p174_p11, %p50_p0 }
  0x37   : > { %s2149_s19 = scalar_select %p1811_p12, 1, 0 }
  0x38   : > { %p1819_p2 = por %p168_p10, %p2150_p1  ;;  %p207_p5 = scmp.lt.s32.totalorder %s1660_s24, 3 }
  0x39   : > { %s2152_s14 = scalar_select %p1823_p4, 1, 0 }
  0x3a   : > { %s2151_s12 = scalar_select %p1819_p2, 1, 0 }
  0x3b   : > { %2153 = sst [smem:[#allocation22_spill]] %s2152_s14  ;;  %p1828_p7 = pnand %p1208_p13, %p207_p5 }
  0x3c   : > { %s1665_s26 = smov [#allocation8]   ;;  %s1211_s30 = sshll.u32 %s1756_s29, 3 }
  0x3d   : > { %s2154_s20 = scalar_select %p1828_p7, 1, 0 }
  0x3e   : > { %s219_s27 = sshll.u32 %s1665_s26, 4  ;;  %p1357_p9 = pneg %p1828_p7  ;;  %s220_s27 = int_to_ptr.vmem [resolvable:$true] %s219_s27 }
  0x3f   : > { %s1212_s7 = sshll.u32 %s1660_s24, 7  ;;  %s240_s18 = scalar_lea.vmem [#allocation2], %s1211_s30 }
  0x40   : > { %p1838_p10 = pnand %p1357_p9, %p2132_p3  ;;  %s1845_s13 = scalar_lea.hbm %s2124_s0, %s1212_s7 }
  0x41   : > { %s247_s1 = sshll.u32 %s240_s18, 4  ;;  %s1487_s26 = scalar_lea.vmem %s220_s27, 256  ;;  %s1847_s1 = int_to_ptr.vmem [resolvable:$true] %s247_s1 }
  0x42   : > { %p1478_p0 = pneg %p1838_p10  ;;  %p1488_p11 = scmp.ne.s32.totalorder %s220_s27, %s1487_s26 }
  0x43   : > { %p1495_p5 = scmp.lt.s32.totalorder %s220_s27, %s220_s27  ;;  %p1496_p9 = scmp.lt.s32.totalorder %s1487_s26, %s1487_s26 }
  0x44   : > { %p1490_p13 = pnand %p1488_p11, %p1478_p0 }
  0x45   : > { %p1497_p3 = por %p1496_p9, %p1495_p5 }
  0x46   : > { %p1491_p1 = pneg %p1490_p13 }
  0x48   : > { %p1498_p4 = pnand %p1497_p3, %p1491_p1 }
  0x4a   : > { %1501 = shalt.err (!%p1498_p4)
}
  0x4b   : > { %s1666_s28 = smov 64   ;;  %s1667_s30 = smov 4  }
  0x4c   : > { %1360 = dma.hbm_to_vmem [thread:$0]  (!%p1838_p10), %s2127_s3, 256, %s220_s27, [#allocation9], %s1666_s28, %s1666_s28, %s1667_s30  }
  0x4d   : > { %s237_s11 = scalar_lea.sflag [#allocation3], %s1756_s29  ;;  %s1502_s18 = scalar_lea.hbm %s1845_s13, 128 }
  0x4e   : > { %p1503_p0 = scmp.ne.s32.totalorder %s1845_s13, %s1502_s18  ;;  %s1507_s25 = scalar_lea.hbm %s2124_s0, 256 }
  0x4f   : > { %p1508_p4 = scmp.lt.s32.totalorder %s1845_s13, %s2124_s0  ;;  %p1509_p13 = scmp.lt.s32.totalorder %s1507_s25, %s1502_s18 }
  0x50   : > { %p1505_p11 = pnand %p1503_p0, %p1778_p8 }
  0x51   : > { %p1510_p1 = por %p1509_p13, %p1508_p4 }
  0x52   : > { %p1506_p3 = pneg %p1505_p11 }
  0x54   : > { %p1511_p5 = pnand %p1510_p1, %p1506_p3 }
  0x56   : > { %1514 = shalt.err (!%p1511_p5)
}
  0x57   : > { %s1515_s28 = scalar_lea.vmem %s1847_s1, 128  ;;  %s1668_s27 = smov [#allocation2]  }
  0x58   : > { %p1516_p10 = scmp.ne.s32.totalorder %s1847_s1, %s1515_s28  ;;  %s1520_s23 = sshll.u32 %s1668_s27, 4  ;;  %s1521_s23 = int_to_ptr.vmem [resolvable:$false] %s1520_s23 }
  0x59   : > { %s1522_s9 = scalar_lea.vmem %s1521_s23, 256  ;;  %p1523_p11 = scmp.lt.s32.totalorder %s1847_s1, %s1521_s23 }
  0x5a   : > { %p1518_p9 = pnand %p1516_p10, %p1778_p8  ;;  %p1524_p2 = scmp.lt.s32.totalorder %s1522_s9, %s1515_s28 }
  0x5c   : > { %p1519_p0 = pneg %p1518_p9  ;;  %p1525_p12 = por %p1524_p2, %p1523_p11 }
  0x5e   : > { %p1526_p7 = pnand %p1525_p12, %p1519_p0 }
  0x60   : > { %1529 = shalt.err (!%p1526_p7)
}
  0x61   : > { %1364 = dma.hbm_to_vmem [thread:$0]  (!%p1760_p6), %s1845_s13, 128, %s1847_s1, %s237_s11  }
  0x62   : > { %s1216_s21 = sshll.u32 %s1756_s29, 1  ;;  %s1217_s25 = sshll.u32 %s1660_s24, 5 }
  0x63   : > { %s284_s7 = scalar_lea.hbm %s2126_s2, %s1217_s25  ;;  %s279_s10 = scalar_lea.vmem [#allocation7], %s1216_s21 }
  0x64   : > { %s286_s18 = sshll.u32 %s279_s10, 4  ;;  %s1530_s26 = scalar_lea.hbm %s284_s7, 32  ;;  %s287_s18 = int_to_ptr.vmem [resolvable:$true] %s286_s18 }
  0x65   : > { %p1531_p12 = scmp.ne.s32.totalorder %s284_s7, %s1530_s26  ;;  %s1535_s23 = scalar_lea.hbm %s2126_s2, 64 }
  0x66   : > { %p1536_p3 = scmp.lt.s32.totalorder %s284_s7, %s2126_s2  ;;  %p1537_p4 = scmp.lt.s32.totalorder %s1535_s23, %s1530_s26 }
  0x67   : > { %p1533_p2 = pnand %p1531_p12, %p1778_p8 }
  0x68   : > { %p1538_p13 = por %p1537_p4, %p1536_p3 }
  0x69   : > { %p1534_p7 = pneg %p1533_p2 }
  0x6b   : > { %p1539_p1 = pnand %p1538_p13, %p1534_p7 }
  0x6d   : > { %1542 = shalt.err (!%p1539_p1)
}
  0x6e   : > { %s1543_s29 = scalar_lea.vmem %s287_s18, 32  ;;  %s1669_s13 = smov [#allocation7]  }
  0x6f   : > { %p1544_p5 = scmp.ne.s32.totalorder %s287_s18, %s1543_s29  ;;  %s1548_s11 = sshll.u32 %s1669_s13, 4  ;;  %s1549_s11 = int_to_ptr.vmem [resolvable:$false] %s1548_s11 }
  0x70   : > { %s1550_s21 = scalar_lea.vmem %s1549_s11, 64  ;;  %p1551_p0 = scmp.lt.s32.totalorder %s287_s18, %s1549_s11 }
  0x71   : > { %p1546_p10 = pnand %p1544_p5, %p1778_p8  ;;  %p1552_p11 = scmp.lt.s32.totalorder %s1550_s21, %s1543_s29 }
  0x73   : > { %p1547_p9 = pneg %p1546_p10  ;;  %p1553_p12 = por %p1552_p11, %p1551_p0 }
  0x75   : > { %p1554_p2 = pnand %p1553_p12, %p1547_p9 }
  0x77   : > { %1557 = shalt.err (!%p1554_p2)
}
  0x78   : > { %1370 = dma.hbm_to_vmem [thread:$0]  (!%p1760_p6), %s284_s7, 32, %s287_s18, %s1772_s15  }
  0x79   : > { %p2156_p7 = scmp.ne.s32.totalorder %s2154_s20, 0 }
  0x7a   : > { %s1898_s17 = sand.u32 (!%p2156_p7), 1, %s1652_s22   ;;  %p2157_p8 = scmp.ne.s32.totalorder (!%p2156_p7), %s2149_s19, 0 }
  0x7b   : > { %295 = sbr.rel (%p2156_p7) target bundleno = 1622 (0x656), region = 40  ;;  %s1901_s25 = sshll.u32 (!%p2156_p7), %s1898_s17, 3 }
  0x7c   : > { %s298_s14 = scalar_lea.sflag (!%p2156_p7), [#allocation3], %s1898_s17  ;;  %s301_s30 = scalar_lea.vmem (!%p2156_p7), [#allocation2], %s1901_s25 }
  0x80   : > { %1627 = dma.done.wait (%p2157_p8), %s298_s14, 128  }
  0x81   : > { %1629 = vsyncadd (%p2157_p8), %s298_s14, 4294967168  ;;  %s306_s8 = sand.u32 1, %s1802_s16   ;;  %s1220_s15 = sshll.u32 %s1898_s17, 4 }
  0x82   : > { %s307_s20 = scalar_lea.sflag [#allocation6], %s306_s8  ;;  %s1911_s7 = scalar_lea.vmem [#allocation5], %s1220_s15 }
  0x83   : > { %1631 = dma.done.wait (%p2157_p8), %s307_s20, 288  }
  0x84   : > { %1633 = vsyncadd (%p2157_p8), %s307_s20, 4294967008  ;;  %s1221_s10 = sshll.u32 %s1898_s17, 1  ;;  %p2158_p6 = scmp.eq.s32.totalorder %s1802_s16, 0 }
  0x85   : > { %s1918_s18 = scalar_lea.vmem [#allocation7], %s1221_s10 }
  0x86   : > { %1635 = dma.done.wait (%p2158_p6), [#allocation9], 256   ;;  %p2159_p3 = pmov %p2158_p6 }
  0x87   : > { %v1670_v0 = vmov 0.0   ;;  %vm1671_vm0 = vmmov 0   ;;  %v1930_v1 = vld [vmem:[#allocation8 + $0x8] sm:$0xff]   ;;  %s1672_s19 = smov 96   ;;  %v1934_v2 = vld [vmem:[#allocation8] sm:$0xff]   ;;  %vm397_vm1 = vcmask 261120  }
  0x88   : > { %1637 = vsyncadd (%p2159_p3), [#allocation9], 4294967040  ;;  %1279 = vmatprep.subr.bf16.mxu1 %v1670_v0  ;;  %1271 = vmatprep.subr.bf16.mxu0 %v1670_v0  ;;  %v1937_v3 = vld [vmem:[%s301_s30] sm:$0xff]  ;;  %v371_v7 = vld [vmem:[%s1911_s7] sm:$0xff]  ;;  %vm511_vm2 = vcmask 64512   ;;  %s1673_s27 = smov 112  }
  0x89   : > { %1283 = vmatprep.mubr.msk.bf16.mxu1 %vm1671_vm0, %v1670_v0  ;;  %1275 = vmatprep.mubr.msk.bf16.mxu0 %vm1671_vm0, %v1670_v0  ;;  %v1943_v4 = vld [vmem:[%s2128_s4] ss:$0 sm:$0xff]  ;;  %v378_v5 = vpack.c.bf16 %v1937_v3, %v1937_v3  ;;  %v372_v8 = vld [vmem:[%s1911_s7 + $0x8] sm:$0xff]  ;;  %s1674_s23 = smov 120   ;;  %s1675_s9 = smov 104   ;;  %v1676_v36 = vmov 0  }
  0x8a   : > { %444 = vrot.lane.b32.xlu0 %v1930_v1, %s1672_s19  ;;  %1272 = vmatpush3.bf16.msra.mxu0 %v1930_v1  ;;  %v441_v10 = vpack.c.bf16 %v372_v8, %v371_v7  ;;  %v696_v35 = vld [vmem:[%s1918_s18] sm:$0x3]  ;;  %vm707_vm5 = vcmask 130048   ;;  %s366_s1 = scalar_lea.vmem [#allocation11], %s1901_s25  ;;  %s1677_s29 = smov 32   ;;  %vm954_vm6 = vcmask 195584  }
  0x8b   : > { %1273 = vmatprep.subr.bf16.mxu0 %v1670_v0  ;;  %448 = vrot.lane.b32.xlu1 %v1943_v4, %s1672_s19  ;;  %vm697_vm3 = vnez %v696_v35  ;;  %s1678_s13 = smov 8   ;;  %s1679_s11 = smov 16  }
  0x8c   : > { %v698_v37 = vsel %vm697_vm3, 16843009, %v1676_v36  ;;  %s1680_s21 = smov 24   ;;  %s1241_s14 = sshll.u32 %s1802_s16, 7 }
  0x8d   : > { %v699_v38 = vunpack.c.0.s8 %v698_v37  ;;  %s1050_s15 = scalar_lea.hbm %s2130_s6, %s1241_s14  ;;  %s1052_s20 = sshll.u32 %s366_s1, 4  ;;  %s1053_s20 = int_to_ptr.vmem [resolvable:$true] %s1052_s20 }
  0x8e   : > { %442 = vrot.lane.b32.xlu0 %v1934_v2, %s1672_s19  ;;  %1274 = vmatpush3.bf16.msra.mxu0 %v1934_v2  ;;  %s1026_s7 = scalar_lea.sflag [#allocation12], %s1898_s17  ;;  %s1558_s10 = scalar_lea.vmem %s1053_s20, 128 }
  0x8f   : > { %1287 = vmatprep.subr.bf16.mxu0 %v1670_v0  ;;  %vm1997_vm4 = vcmp.ne.s32.totalorder %v699_v38, 0  ;;  %p1559_p4 = scmp.ne.s32.totalorder %s1053_s20, %s1558_s10  ;;  %p2162_p13 = scmp.ne.s32.totalorder %s2151_s12, 0 }
  0x90   : > { %s1681_s18 = smov [#allocation11]  }
  0x91   : > { %1276 = vmatmul.mubr.msk.bf16.vlgmr.msra.gmra.mxu0 %vm397_vm1, %v378_v5  ;;  %p1560_p1 = pnand %p1559_p4, %p2162_p13 }
  0x92   : > { %1289 = vmatprep.mubr.msk.bf16.mxu0 %vm1671_vm0, %v1670_v0 }
  0x93   : > { %p1561_p5 = pneg %p1560_p1 }
  0xfc   : > { %v445_v6 = vpop.permute.xlu0 %444 }
  0xfd   : > { %1280 = vmatpush3.bf16.msra.mxu1 %v445_v6  ;;  %v449_v16 = vpop.permute.xlu1 %448 }
  0xfe   : > { %1281 = vmatprep.subr.bf16.mxu1 %v1670_v0 }
 0x100   : > { %v443_v9 = vpop.permute.xlu0 %442 }
 0x101   : > { %1282 = vmatpush3.bf16.msra.mxu1 %v443_v9 }
 0x102   : > { %1293 = vmatprep.subr.bf16.mxu1 %v1670_v0 }
 0x104   : > { %1284 = vmatmul.mubr.msk.bf16.vlgmr.msra.gmra.mxu1 %vm397_vm1, %v441_v10 }
 0x105   : > { %1295 = vmatprep.mubr.msk.bf16.mxu1 %vm1671_vm0, %v1670_v0 }
 0x151   : > { %v435_v11 = vpop.f32.mrf.mxu0 }
 0x152   : > { %v436_v21 = vadd.f32 %v1943_v4, %v435_v11 }
 0x153   : > { %v1277_v12 = vpop.f32.mrf.mxu0 }
 0x154   : > { %v495_v24 = vpack.c.bf16 %v436_v21, %v436_v21 }
 0x155   : > { %v438_v13 = vpop.f32.mrf.mxu0 }
 0x157   : > { %v1278_v14 = vpop.f32.mrf.mxu0 }
 0x1c4   : > { %v488_v15 = vpop.f32.mrf.mxu1 }
 0x1c5   : > { %v489_v19 = vadd.f32 %v488_v15, %v449_v16 }
 0x1c6   : > { %v1285_v17 = vpop.f32.mrf.mxu1 }
 0x1c8   : > { %v491_v18 = vpop.f32.mrf.mxu1 }
 0x1c9   : > { %v492_v20 = vadd.f32 %v491_v18, %v449_v16 }
 0x1ca   : > { %v1286_v22 = vpop.f32.mrf.mxu1 }
 0x1cb   : > { %v1964_v23 = vpack.c.bf16 %v492_v20, %v489_v19 }
 0x1cd   : > { %507 = vrot.lane.b32.xlu0 %v1964_v23, %s1673_s27  ;;  %505 = vrot.lane.b32.xlu1 %v1964_v23, %s1674_s23  ;;  %v516_v25 = vsel %vm511_vm2, %v1964_v23, 0 }
 0x1ce   : > { %1288 = vmatpush3.bf16.xpose.msra.mxu0 %v516_v25 }
 0x1cf   : > { %1299 = vmatprep.subr.bf16.mxu0 %v1670_v0 }
 0x1d1   : > { %509 = vrot.lane.b32.xlu0 %v1964_v23, %s1675_s9  ;;  %498 = vrot.lane.b32.xlu1 %v495_v24, %s1674_s23 }
 0x1d5   : > { %502 = vrot.lane.b32.xlu0 %v495_v24, %s1675_s9  ;;  %500 = vrot.lane.b32.xlu1 %v495_v24, %s1673_s27 }
 0x1d6   : > { %1290 = vmatmul.mubr.msk.bf16.vlgmr.msra.gmra.mxu0 %vm511_vm2, %v495_v24 }
 0x1d7   : > { %1301 = vmatprep.mubr.msk.bf16.mxu0 %vm1671_vm0, %v1670_v0 }
 0x23f   : > { %v1975_v26 = vpop.permute.xlu0 %507  ;;  %v506_v27 = vpop.permute.xlu1 %505 }
 0x240   : > { %v608_v28 = vsel %vm511_vm2, %v1975_v26, 0  ;;  %v562_v29 = vsel %vm511_vm2, %v506_v27, 0 }
 0x241   : > { %1294 = vmatpush3.bf16.xpose.msra.mxu1 %v562_v29  ;;  %1300 = vmatpush3.bf16.xpose.msra.mxu0 %v608_v28 }
 0x242   : > { %1305 = vmatprep.subr.bf16.mxu1 %v1670_v0  ;;  %1311 = vmatprep.subr.bf16.mxu0 %v1670_v0 }
 0x243   : > { %v499_v30 = vpop.permute.xlu1 %498  ;;  %v1982_v31 = vpop.permute.xlu0 %509 }
 0x244   : > { %v654_v33 = vsel %vm511_vm2, %v1982_v31, 0 }
 0x247   : > { %v501_v32 = vpop.permute.xlu1 %500  ;;  %v503_v34 = vpop.permute.xlu0 %502 }
 0x248   : > { %1296 = vmatmul.mubr.msk.bf16.vlgmr.msra.gmra.mxu1 %vm511_vm2, %v499_v30  ;;  %1302 = vmatmul.mubr.msk.bf16.vlgmr.msra.gmra.mxu0 %vm511_vm2, %v501_v32 }
 0x249   : > { %1306 = vmatpush3.bf16.xpose.msra.mxu1 %v654_v33  ;;  %1307 = vmatprep.mubr.msk.bf16.mxu1 %vm1671_vm0, %v1670_v0 }
 0x24a   : > { %1317 = vmatprep.subr.bf16.mxu1 %v1670_v0  ;;  %1313 = vmatprep.mubr.msk.bf16.mxu0 %vm1671_vm0, %v1670_v0 }
 0x250   : > { %1308 = vmatmul.mubr.msk.bf16.vlgmr.msra.gmra.mxu1 %vm511_vm2, %v503_v34 }
 0x251   : > { %1319 = vmatprep.mubr.msk.bf16.mxu1 %vm1671_vm0, %v1670_v0 }
 0x296   : > { %v552_v40 = vpop.f32.mrf.mxu0 }
 0x297   : > { %v703_v41 = vsel %vm1997_vm4, -1e+30, %v552_v40 }
 0x298   : > { %v1291_v42 = vpop.f32.mrf.mxu0  ;;  %v708_v43 = vsel %vm707_vm5, %v703_v41, -inf }
 0x299   : > { %709 = vmax.xlane.f32.xlu1 %v708_v43 }
 0x29a   : > { %v555_v44 = vpop.f32.mrf.mxu0 }
 0x29c   : > { %v1292_v45 = vpop.f32.mrf.mxu0 }
 0x308   : > { %v598_v46 = vpop.f32.mrf.mxu1  ;;  %v644_v47 = vpop.f32.mrf.mxu0 }
 0x309   : > { %v704_v48 = vsel %vm1997_vm4, -1e+30, %v598_v46  ;;  %v705_v52 = vsel %vm1997_vm4, -1e+30, %v644_v47 }
 0x30a   : > { %v1297_v49 = vpop.f32.mrf.mxu1  ;;  %v1303_v50 = vpop.f32.mrf.mxu0  ;;  %v711_v51 = vsel %vm707_vm5, %v704_v48, -inf  ;;  %v714_v57 = vsel %vm707_vm5, %v705_v52, -inf }
 0x30b   : > { %712 = vmax.xlane.f32.xlu0 %v711_v51 }
 0x30c   : > { %v601_v53 = vpop.f32.mrf.mxu1  ;;  %v647_v54 = vpop.f32.mrf.mxu0 }
 0x30e   : > { %v1298_v55 = vpop.f32.mrf.mxu1  ;;  %v1304_v56 = vpop.f32.mrf.mxu0 }
 0x30f   : > { %715 = vmax.xlane.f32.xlu0 %v714_v57 }
 0x310   : > { %v690_v58 = vpop.f32.mrf.mxu1 }
 0x311   : > { %v706_v59 = vsel %vm1997_vm4, -1e+30, %v690_v58 }
 0x312   : > { %v1309_v60 = vpop.f32.mrf.mxu1  ;;  %v717_v61 = vsel %vm707_vm5, %v706_v59, -inf }
 0x313   : > { %718 = vmax.xlane.f32.xlu1 %v717_v61 }
 0x314   : > { %v693_v62 = vpop.f32.mrf.mxu1 }
 0x316   : > { %v1310_v63 = vpop.f32.mrf.mxu1 }
 0x322   : > { %v710_v5 = vpop.xlane.xlu1 %709 }
 0x323   : > { %v720_v6 = vsub.f32 %v703_v41, %v710_v5 }
 0x324   : > { %802 = vrot.lane.b32.xlu1 %v506_v27, %s1672_s19 }
 0x325   : > { %v724_v7 = vmul.f32 1.442695, %v720_v6 }
 0x327   : > { %1432 = vpow2.f32 %v724_v7 }
 0x334   : > { %v1433_v8 = vpop.eup %1432 }
 0x335   : > { %v732_v9 = vsel %vm707_vm5, %v1433_v8, 0.0 }
 0x336   : > { %733 = vadd.xlane.f32.xlu0 %v732_v9 }
 0x34c   : > { %756 = vrot.lane.b32.xlu0 %v1964_v23, %s1672_s19 }
 0x394   : > { %v713_v10 = vpop.xlane.xlu0 %712 }
 0x395   : > { %v721_v11 = vsub.f32 %v704_v48, %v713_v10 }
 0x397   : > { %v726_v12 = vmul.f32 1.442695, %v721_v11 }
 0x398   : > { %v716_v13 = vpop.xlane.xlu0 %715 }
 0x399   : > { %1434 = vpow2.f32 %v726_v12  ;;  %v722_v14 = vsub.f32 %v705_v52, %v716_v13 }
 0x39b   : > { %v728_v15 = vmul.f32 1.442695, %v722_v14 }
 0x39c   : > { %v719_v16 = vpop.xlane.xlu1 %718 }
 0x39d   : > { %1436 = vpow2.f32 %v728_v15  ;;  %v723_v17 = vsub.f32 %v706_v59, %v719_v16 }
 0x39f   : > { %v730_v18 = vmul.f32 1.442695, %v723_v17 }
 0x3a0   : > { %v803_v19 = vpop.permute.xlu1 %802 }
 0x3a1   : > { %1438 = vpow2.f32 %v730_v18  ;;  %1318 = vmatpush3.bf16.msra.mxu1 %v803_v19 }
 0x3a2   : > { %1329 = vmatprep.subr.bf16.mxu1 %v1670_v0 }
 0x3a6   : > { %v1435_v20 = vpop.eup %1434 }
 0x3a7   : > { %v735_v21 = vsel %vm707_vm5, %v1435_v20, 0.0 }
 0x3a8   : > { %736 = vadd.xlane.f32.xlu1 %v735_v21 }
 0x3aa   : > { %v1437_v22 = vpop.eup %1436 }
 0x3ab   : > { %v738_v23 = vsel %vm707_vm5, %v1437_v22, 0.0 }
 0x3ac   : > { %739 = vadd.xlane.f32.xlu0 %v738_v23 }
 0x3ae   : > { %v1439_v24 = vpop.eup %1438 }
 0x3af   : > { %v741_v25 = vsel %vm707_vm5, %v1439_v24, 0.0 }
 0x3b0   : > { %742 = vadd.xlane.f32.xlu1 %v741_v25 }
 0x3bf   : > { %v734_v27 = vpop.xlane.xlu0 %733 }
 0x3c0   : > { %1440 = vrcp.f32 %v734_v27 }
 0x3c1   : > { %848 = vrot.lane.b32.xlu1 %v1975_v26, %s1672_s19 }
 0x3c2   : > { %894 = vrot.lane.b32.xlu0 %v1982_v31, %s1672_s19  ;;  %s1562_s19 = sshll.u32 %s1681_s18, 4  ;;  %s1563_s19 = int_to_ptr.vmem [resolvable:$false] %s1562_s19 }
 0x3c3   : > { %v757_v28 = vpop.permute.xlu0 %756  ;;  %s1564_s26 = scalar_lea.vmem %s1563_s19, 256  ;;  %p1565_p10 = scmp.lt.s32.totalorder %s1053_s20, %s1563_s19 }
 0x3c4   : > { %1312 = vmatpush3.bf16.msra.mxu0 %v757_v28  ;;  %p1566_p9 = scmp.lt.s32.totalorder %s1564_s26, %s1558_s10 }
 0x3c5   : > { %1323 = vmatprep.subr.bf16.mxu0 %v1670_v0  ;;  %959 = vrot.lane.b32.xlu1 %v1930_v1, %s1677_s29 }
 0x3c6   : > { %p1567_p0 = por %p1566_p9, %p1565_p10 }
 0x3c8   : > { %p1568_p11 = pnand %p1567_p0, %p1561_p5 }
 0x3cd   : > { %v1441_v29 = vpop.eup %1440 }
 0x3ce   : > { %v748_v30 = vmul.f32 %v1441_v29, %v1433_v8 }
 0x3d0   : > { %v752_v32 = vpack.c.bf16 %v748_v30, %v748_v30  ;;  %v1011_v42 = vsel %vm707_vm5, %v748_v30, 0.0 }
 0x3d2   : > { %1314 = vmatmul.mubr.msk.bf16.vlgmr.msra.gmra.mxu0 %vm707_vm5, %v752_v32 }
 0x3d3   : > { %1325 = vmatprep.mubr.msk.bf16.mxu0 %vm1671_vm0, %v1670_v0 }
 0x431   : > { %v737_v33 = vpop.xlane.xlu1 %736 }
 0x432   : > { %1442 = vrcp.f32 %v737_v33 }
 0x435   : > { %v740_v34 = vpop.xlane.xlu0 %739 }
 0x436   : > { %1444 = vrcp.f32 %v740_v34 }
 0x439   : > { %v743_v26 = vpop.xlane.xlu1 %742  ;;  %v895_v39 = vpop.permute.xlu0 %894 }
 0x43a   : > { %1446 = vrcp.f32 %v743_v26 }
 0x43d   : > { %v849_v35 = vpop.permute.xlu1 %848 }
 0x43e   : > { %1324 = vmatpush3.bf16.msra.mxu0 %v849_v35 }
 0x43f   : > { %v1443_v31 = vpop.eup %1442  ;;  %1335 = vmatprep.subr.bf16.mxu0 %v1670_v0 }
 0x440   : > { %v749_v36 = vmul.f32 %v1443_v31, %v1435_v20 }
 0x441   : > { %v960_v57 = vpop.permute.xlu1 %959 }
 0x442   : > { %v753_v37 = vpack.c.bf16 %v749_v36, %v749_v36  ;;  %v1012_v40 = vsel %vm707_vm5, %v749_v36, 0.0 }
 0x443   : > { %v1445_v38 = vpop.eup %1444  ;;  %v1013_v46 = vadd.f32 %v1012_v40, %v1011_v42 }
 0x444   : > { %1320 = vmatmul.mubr.msk.bf16.vlgmr.msra.gmra.mxu1 %vm707_vm5, %v753_v37  ;;  %v750_v41 = vmul.f32 %v1445_v38, %v1437_v22 }
 0x445   : > { %1330 = vmatpush3.bf16.msra.mxu1 %v895_v39  ;;  %1331 = vmatprep.mubr.msk.bf16.mxu1 %vm1671_vm0, %v1670_v0 }
 0x446   : > { %v754_v43 = vpack.c.bf16 %v750_v41, %v750_v41  ;;  %v1014_v44 = vsel %vm707_vm5, %v750_v41, 0.0 }
 0x447   : > { %v1447_v45 = vpop.eup %1446  ;;  %v1015_v48 = vadd.f32 %v1014_v44, %v1013_v46 }
 0x448   : > { %1326 = vmatmul.mubr.msk.bf16.vlgmr.msra.gmra.mxu0 %vm707_vm5, %v754_v43  ;;  %v751_v47 = vmul.f32 %v1447_v45, %v1439_v24 }
 0x449   : > { %1339 = vmatprep.mubr.msk.bf16.mxu0 %vm1671_vm0, %v1670_v0  ;;  %1336 = vmatpush3.bf16.msra.mxu0 %v960_v57 }
 0x44a   : > { %v755_v49 = vpack.c.bf16 %v751_v47, %v751_v47  ;;  %v1016_v50 = vsel %vm707_vm5, %v751_v47, 0.0  ;;  %1337 = vmatprep.subr.bf16.mxu0 %v1670_v0 }
 0x44b   : > { %v1017_v51 = vadd.f32 %v1016_v50, %v1015_v48 }
 0x44c   : > { %1332 = vmatmul.mubr.msk.bf16.vlgmr.msra.gmra.mxu1 %vm707_vm5, %v755_v49 }
 0x44d   : > { %v1018_v52 = vmul.f32 0.25, %v1017_v51 }
 0x44f   : > { %1019 = vst.msk [vmem:[%s366_s1] sm:$0xff] %vm707_vm5, %v1018_v52 }
 0x492   : > { %v796_v53 = vpop.f32.mrf.mxu0 }
 0x494   : > { %v1315_v54 = vpop.f32.mrf.mxu0 }
 0x496   : > { %v799_v55 = vpop.f32.mrf.mxu0 }
 0x498   : > { %v1316_v56 = vpop.f32.mrf.mxu0 }
 0x504   : > { %v842_v58 = vpop.f32.mrf.mxu1 }
 0x505   : > { %941 = vrot.lane.b32.xlu0 %v842_v58, %s1678_s13 }
 0x506   : > { %v1321_v59 = vpop.f32.mrf.mxu1 }
 0x508   : > { %v845_v60 = vpop.f32.mrf.mxu1  ;;  %v888_v61 = vpop.f32.mrf.mxu0 }
 0x509   : > { %945 = vrot.lane.b32.xlu1 %v888_v61, %s1679_s11 }
 0x50a   : > { %v1322_v62 = vpop.f32.mrf.mxu1  ;;  %v1327_v63 = vpop.f32.mrf.mxu0 }
 0x50c   : > { %v891_v5 = vpop.f32.mrf.mxu0  ;;  %v934_v1 = vpop.f32.mrf.mxu1 }
 0x50d   : > { %949 = vrot.lane.b32.xlu0 %v934_v1, %s1680_s21  ;;  %957 = vrot.lane.b32.xlu1 %v1934_v2, %s1677_s29 }
 0x50e   : > { %v1328_v6 = vpop.f32.mrf.mxu0  ;;  %v1333_v7 = vpop.f32.mrf.mxu1 }
 0x510   : > { %v937_v0 = vpop.f32.mrf.mxu1 }
 0x511   : > { %963 = vrot.lane.b32.xlu0 %v1943_v4, %s1677_s29 }
 0x512   : > { %v1334_v8 = vpop.f32.mrf.mxu1 }
 0x577   : > { %v942_v9 = vpop.permute.xlu0 %941 }
 0x578   : > { %v952_v11 = vsel %vm511_vm2, %v796_v53, %v942_v9 }
 0x57b   : > { %v946_v10 = vpop.permute.xlu1 %945 }
 0x57c   : > { %v953_v12 = vsel %vm707_vm5, %v952_v11, %v946_v10 }
 0x57f   : > { %v950_v13 = vpop.permute.xlu0 %949  ;;  %v958_v2 = vpop.permute.xlu1 %957 }
 0x580   : > { %v955_v14 = vsel %vm954_vm6, %v953_v12, %v950_v13  ;;  %1338 = vmatpush3.bf16.msra.mxu0 %v958_v2 }
 0x581   : > { %v956_v15 = vpack.c.bf16 %v955_v14, %v955_v14 }
 0x583   : > { %1340 = vmatmul.mubr.msk.bf16.vlgmr.msra.gmra.mxu0 %vm397_vm1, %v956_v15 }
 0x584   : > { %1571 = shalt.err (!%p1568_p11)
}
 0x585   : > { %s1572_s28 = scalar_lea.hbm %s1050_s15, 128  ;;  %s1576_s9 = scalar_lea.hbm %s2130_s6, 256 }
 0x586   : > { %p1573_p12 = scmp.ne.s32.totalorder %s1050_s15, %s1572_s28  ;;  %p1577_p8 = scmp.lt.s32.totalorder %s1050_s15, %s2130_s6 }
 0x587   : > { %p1578_p6 = scmp.lt.s32.totalorder %s1576_s9, %s1572_s28 }
 0x588   : > { %p1574_p2 = pnand %p1573_p12, %p2162_p13 }
 0x589   : > { %p1579_p3 = por %p1578_p6, %p1577_p8 }
 0x58a   : > { %p1575_p7 = pneg %p1574_p2 }
 0x58c   : > { %p1580_p4 = pnand %p1579_p3, %p1575_p7 }
 0x58e   : > { %1583 = shalt.err (!%p1580_p4)
}
 0x58f   : > { %1354 = dma.vmem_to_hbm [thread:$0]  (%p2162_p13), %s1053_s20, 128, %s1050_s15, %s1026_s7   ;;  %v964_v4 = vpop.permute.xlu0 %963 }
 0x590   : > { %s359_s13 = scalar_lea.vmem [#allocation10], %s1901_s25  ;;  %s2080_s8 = scalar_lea.hbm %s2129_s5, %s1241_s14 }
 0x591   : > { %s1039_s11 = sshll.u32 %s359_s13, 4  ;;  %s1021_s25 = scalar_lea.sflag [#allocation4], %s1898_s17  ;;  %s2082_s11 = int_to_ptr.vmem [resolvable:$true] %s1039_s11 }
 0x592   : > { %s1584_s15 = scalar_lea.vmem %s2082_s11, 128  ;;  %s1682_s16 = smov [#allocation10]  }
 0x593   : > { %p1585_p1 = scmp.ne.s32.totalorder %s2082_s11, %s1584_s15  ;;  %s1588_s20 = sshll.u32 %s1682_s16, 4  ;;  %s1589_s20 = int_to_ptr.vmem [resolvable:$false] %s1588_s20 }
 0x594   : > { %s1590_s14 = scalar_lea.vmem %s1589_s20, 256  ;;  %p1591_p9 = scmp.lt.s32.totalorder %s2082_s11, %s1589_s20 }
 0x595   : > { %p1586_p5 = pnand %p1585_p1, %p2162_p13  ;;  %p1592_p0 = scmp.lt.s32.totalorder %s1590_s14, %s1584_s15 }
 0x597   : > { %p1587_p10 = pneg %p1586_p5  ;;  %p1593_p11 = por %p1592_p0, %p1591_p9 }
 0x599   : > { %p1594_p12 = pnand %p1593_p11, %p1587_p10 }
 0x643   : > { %v1003_v16 = vpop.f32.mrf.mxu0 }
 0x644   : > { %v1004_v17 = vadd.f32 %v1003_v16, %v964_v4 }
 0x645   : > { %v1341_v18 = vpop.f32.mrf.mxu0 }
 0x646   : > { %v1009_v19 = vadd.f32 %v1004_v17, %v1937_v3 }
 0x647   : > { %v1006_v20 = vpop.f32.mrf.mxu0 }
 0x648   : > { %1010 = vst.msk [vmem:[%s359_s13] sm:$0xff] %vm397_vm1, %v1009_v19 }
 0x649   : > { %v1342_v21 = vpop.f32.mrf.mxu0 }
 0x64a   : > { %1597 = shalt.err (!%p1594_p12)
}
 0x64b   : > { %s1598_s7 = scalar_lea.hbm %s2080_s8, 128  ;;  %s1602_s18 = scalar_lea.hbm %s2129_s5, 256 }
 0x64c   : > { %p1599_p2 = scmp.ne.s32.totalorder %s2080_s8, %s1598_s7  ;;  %p1603_p6 = scmp.lt.s32.totalorder %s2080_s8, %s2129_s5 }
 0x64d   : > { %p1604_p3 = scmp.lt.s32.totalorder %s1602_s18, %s1598_s7 }
 0x64e   : > { %p1600_p7 = pnand %p1599_p2, %p2162_p13 }
 0x64f   : > { %p1605_p4 = por %p1604_p3, %p1603_p6 }
 0x650   : > { %p1601_p8 = pneg %p1600_p7 }
 0x652   : > { %p1606_p1 = pnand %p1605_p4, %p1601_p8 }
 0x654   : > { %1609 = shalt.err (!%p1606_p1)
}
 0x655   : > { %1353 = dma.vmem_to_hbm [thread:$0]  (%p2162_p13), %s2082_s11, 128, %s2080_s8, %s1021_s25  }
 0x656 PF: > { %s2163_s28 = sld [smem:[#allocation18_spill]]  ;;  %p2166_p10 = scmp.ge.s32.totalorder %s1660_s24, 2 }
 0x657   : > { %s2164_s27 = sld [smem:[#allocation22_spill]] }
 0x65c   : > { %s1064_s23 = sand.u32 1, %s2163_s28  }
 0x65d   : > { %p2165_p5 = scmp.ne.s32.totalorder %s2164_s27, 0  ;;  %s1065_s9 = scalar_lea.sflag [#allocation4], %s1064_s23 }
 0x65f   : > { %p1372_p9 = pnand %p2166_p10, %p2165_p5 }
 0x661   : > { %p1373_p0 = pneg %p1372_p9 }
 0x663   : > { %1639 = dma.done.wait (%p1373_p0), %s1065_s9, 128  }
 0x664   : > { %1641 = vsyncadd (%p1373_p0), %s1065_s9, 4294967168  ;;  %s1074_s1 = scalar_lea.sflag [#allocation12], %s1064_s23 }
 0x665   : > { %1643 = dma.done.wait (%p1373_p0), %s1074_s1, 128  }
 0x666   : > { %1645 = vsyncadd (%p1373_p0), %s1074_s1, 4294967168  ;;  %s2167_s24 = sld [smem:[#allocation20_spill]]  ;;  %s2170_s21 = smov %s1652_s22 }
 0x667   : > { %s2168_s12 = sld [smem:[#allocation19_spill]] }
 0x668   : > { %s2169_s23 = sld [smem:[#allocation21_spill]] }
 0x66c   : > { %p27_p13 = scmp.ge.s32.totalorder %s2167_s24, 4  }
 0x66d   : > { %s2171_s22 = smov %s2168_s12 }
 0x66e   :  { %29 = sbr.rel (!%p27_p13) target bundleno = 12 (0xc), region = 130 }
 0x673   :  { %1079 = vsyncpa [#allocation3], 1 }
 0x674   :  { %1081 = vsyncpa [#allocation3 + $0x1], 1 }
 0x675   :  { %1082 = vsyncpa [#allocation6], 1 }
 0x676   :  { %1084 = vsyncpa [#allocation6 + $0x1], 1 }
 0x677   :  { %1085 = vsyncpa [#allocation9], 1 }
 0x678   :  { %1086 = vsyncpa [#allocation4], 1 }
 0x679   :  { %1088 = vsyncpa [#allocation4 + $0x1], 1 }
 0x67a   :  { %1089 = vsyncpa [#allocation12], 1 }
 0x67b   :  { %1091 = vsyncpa [#allocation12 + $0x1], 1 }

</bundles_post_ra>
